<compile_context>
chip_gen: v6e
topology: v6e:2x2x1
jax: 0.10.0
libtpu: 0.0.40
codegen_flags: <defaults>
</compile_context>

<pallas_src>
import functools

import jax
import jax.numpy as jnp
from jax.experimental import pallas as pl
from jax.experimental.pallas import tpu as pltpu

IGNORE_INDEX = -100


def _round_up(x, m):
    return ((x + m - 1) // m) * m


def _wce_kernel(logits_ref, labels_ref, weights_ref, out_ref, *, total_rows):
    core = pl.program_id(0)          # parallel axis (2-way row split, megacore on v7x)
    step = pl.program_id(1)          # arbitrary axis (accumulation over row tiles)
    n_steps = pl.num_programs(1)

    @pl.when(step == 0)
    def _init():
        out_ref[...] = jnp.zeros_like(out_ref)

    logits = logits_ref[...]                         # (C, TN) wire dtype (f32 or bf16)
    labels = labels_ref[...]                         # (1, TN) i32
    w = weights_ref[...]                             # (C, 1)  f32

    c, tn = logits.shape

    # Global row ids: mask (a) the partial last block, (b) the clamped duplicate block
    # the second core re-reads when the block count is odd, (c) lane padding.
    global_block = core * n_steps + step
    row_ids = global_block * tn + jax.lax.broadcasted_iota(jnp.int32, (1, tn), 1)
    valid = (labels != IGNORE_INDEX) & (row_ids < total_rows)          # (1, TN)

    # Numerically-stable log-sum-exp over the class (sublane) axis.  The max stays in
    # the wire dtype (exact; bf16-native reduce on v6e/v7x halves vreg traffic); the
    # shift/exp/log run in f32.
    m = jnp.max(logits, axis=0, keepdims=True)                         # (1, TN)
    shifted = logits.astype(jnp.float32) - m.astype(jnp.float32)       # (C, TN) f32
    lse = jnp.log(jnp.sum(jnp.exp(shifted), axis=0, keepdims=True))    # (1, TN)

    # One-hot match as a bool mask; the two masked sublane reductions share the mask
    # and run back-to-back (single mask build per step).
    class_ids = jax.lax.broadcasted_iota(jnp.int32, (c, tn), 0)
    mask = class_ids == labels                                         # (C, TN)
    w_b = jnp.broadcast_to(w, (c, tn))                                 # lane broadcast
    tgt_shift = jnp.sum(jnp.where(mask, shifted, 0.0), axis=0, keepdims=True)  # (1,TN)
    tgt_w = jnp.sum(jnp.where(mask, w_b, 0.0), axis=0, keepdims=True)          # (1,TN)

    # -logp[y] = lse - shifted[y]; invalid lanes (ignore_index / OOB garbage rows) are
    # discarded by the select before they can reach the accumulators (0*Inf never sums).
    nll = jnp.where(valid, tgt_w * (lse - tgt_shift), 0.0)             # (1, TN)
    den = jnp.where(valid, tgt_w, 0.0)                                 # (1, TN)

    # Vectorized accumulation into the resident, lane-dense output block.
    out_ref[0:1, :] += nll
    out_ref[1:2, :] += den


def weighted_cross_entropy_loss(logits, labels, class_weights, *, block_rows=None,
                                num_splits=2):
    """logits: (B, S, C) float (f32 or bf16), labels: (B, S) int,
    class_weights: (C,) float -> scalar f32 loss (F.cross_entropy semantics)."""
    b, s, c = logits.shape
    n = b * s
    itemsize = jnp.dtype(logits.dtype).itemsize

    # Rows-on-lanes layout: classes on the sublane axis, rows on the 128-lane axis.
    # (The transpose costs one HBM pass; this kernel is EUP/overhead-bound, not
    #  HBM-bound, so the lane-dense compute is the better trade.)
    logits_t = logits.reshape(n, c).T                       # (C, N), wire dtype
    labels_r = labels.reshape(1, n).astype(jnp.int32)       # (1, N)
    w2 = class_weights.reshape(c, 1).astype(jnp.float32)    # (C, 1)

    # Lane-align the row axis; padded rows get ignore_index so they drop out.
    n_pad = _round_up(max(n, 1), 128)
    if n_pad != n:
        logits_t = jnp.pad(logits_t, ((0, 0), (0, n_pad - n)))
        labels_r = jnp.pad(labels_r, ((0, 0), (0, n_pad - n)),
                           constant_values=IGNORE_INDEX)

    # --- VMEM accounting (lane/sublane padded, double-buffered) --------------------
    sublane_pack = 8 * (4 // itemsize)                       # 8 for f32, 16 for bf16
    logits_bpl = _round_up(c, sublane_pack) * itemsize       # logits bytes/lane/buffer
    labels_bpl = 8 * 4                                       # (1,TN) i32 pads 1->8 rows
    out_bpl = 8 * 4                                          # (2,TN) f32 pads 2->8 rows
    bytes_per_lane = 2 * (logits_bpl + labels_bpl) + 2 * out_bpl

    if block_rows is None:
        budget = 40 * 1024 * 1024   # safely under v7x's 64 MiB physical VMEM
        block_rows = budget // bytes_per_lane
    block_rows = max(128, min(int(block_rows), 32 * 1024, n_pad))
    tn = _round_up(block_rows, 128)                          # still <= n_pad

    n_blocks = pl.cdiv(n_pad, tn)
    n_steps = pl.cdiv(n_blocks, num_splits)
    last_block = n_blocks - 1
    grid = (num_splits, n_steps)

    def row_block(cix, i):
        # Clamp the duplicate tail block (odd block count); its rows are masked out
        # in-kernel via the global row-id check, so nothing is double counted.
        return (0, jnp.minimum(cix * n_steps + i, last_block))

    kernel = functools.partial(_wce_kernel, total_rows=n)

    # TODO(synk): for vocab-scale C, add a class-blocked grid axis with an online LSE
    # (running max/sum scratch) instead of a single (C, TN) tile.
    out = pl.pallas_call(
        kernel,
        out_shape=jax.ShapeDtypeStruct((2, num_splits * tn), jnp.float32),
        grid=grid,
        in_specs=[
            pl.BlockSpec((c, tn), row_block),                 # logits (C, TN)
            pl.BlockSpec((1, tn), row_block),                 # labels (1, TN)
            pl.BlockSpec((c, 1), lambda cix, i: (0, 0)),      # class weights (C, 1)
        ],
        out_specs=pl.BlockSpec((2, tn), lambda cix, i: (0, cix)),   # per-core partials
        compiler_params=pltpu.CompilerParams(
            dimension_semantics=("parallel", "arbitrary"),
            vmem_limit_bytes=48 * 1024 * 1024,
        ),
        cost_estimate=pl.CostEstimate(
            flops=8 * n * c,
            transcendentals=n * (c + 1),
            bytes_accessed=n_pad * c * itemsize + n_pad * 4 + c * 4
                           + 2 * num_splits * tn * 4,
        ),
    )(logits_t, labels_r, w2)

    # Tiny final reduce + divide fuse into one XLA op.  NaN if every row is
    # ignore_index, matching torch semantics.
    num = jnp.sum(out[0])
    den = jnp.sum(out[1])
    return (num / den).astype(jnp.float32)


def _reference_loss(logits, labels, class_weights):
    """Pure-JAX reference matching F.cross_entropy(weight=w, ignore_index=-100)."""
    b, s, c = logits.shape
    lg = logits.reshape(-1, c).astype(jnp.float32)
    lb = labels.reshape(-1)
    logp = jax.nn.log_softmax(lg, axis=-1)
    valid = lb != IGNORE_INDEX
    safe_lb = jnp.where(valid, lb, 0)
    tgt_logp = jnp.take_along_axis(logp, safe_lb[:, None], axis=-1)[:, 0]
    tgt_w = class_weights[safe_lb]
    num = jnp.sum(jnp.where(valid, -tgt_w * tgt_logp, 0.0))
    den = jnp.sum(jnp.where(valid, tgt_w, 0.0))
    return num / den


def build_class_weights(num_labels, target_classes, class_weight_factor=5.0):
    """Deterministic synthetic stand-in for the tag2id-driven __init__:
    indices 2,3,4 ~ STRATEGY_INSTRUCTION/TRACK_CONDITION (factor weight),
    6, 8 ~ TECHNICAL_ISSUE/INCIDENT (weight 3.0)."""
    strategy_or_track = {2, 3, 4}
    tech_or_incident = {6, 8}
    w = jnp.ones((num_labels,), dtype=jnp.float32)
    for cls_idx in target_classes:
        if cls_idx in strategy_or_track:
            w = w.at[cls_idx].set(class_weight_factor)
        elif cls_idx in tech_or_incident:
            w = w.at[cls_idx].set(3.0)
    return w


if __name__ == "__main__":
    key = jax.random.PRNGKey(0)
    batch, seq, num_labels = 2, 8, 13

    k1, k2, k3 = jax.random.split(key, 3)
    logits = jax.random.normal(k1, (batch, seq, num_labels), dtype=jnp.float32)
    labels = jax.random.randint(k2, (batch, seq), 0, num_labels, dtype=jnp.int32)
    ignore_mask = jax.random.bernoulli(k3, 0.25, (batch, seq))
    labels = jnp.where(ignore_mask, IGNORE_INDEX, labels)

    class_weights = build_class_weights(num_labels, target_classes=[2, 4, 6])

    # 1) f32 path (single row tile per core, second core's tile fully masked).
    loss = jax.block_until_ready(weighted_cross_entropy_loss(logits, labels, class_weights))
    ref = _reference_loss(logits, labels, class_weights)
    assert jnp.allclose(loss, ref, rtol=1e-5, atol=1e-5), (loss, ref)

    # 2) bf16 on-the-wire path (halves DMA bytes; max in bf16, rest f32 in-kernel).
    logits_bf16 = logits.astype(jnp.bfloat16)
    loss_bf16 = jax.block_until_ready(
        weighted_cross_entropy_loss(logits_bf16, labels, class_weights))
    ref_bf16 = _reference_loss(logits_bf16, labels, class_weights)
    assert jnp.allclose(loss_bf16, ref_bf16, rtol=1e-4, atol=1e-4), (loss_bf16, ref_bf16)

    # 3) multi-step grid + lane padding + odd block count (clamped duplicate tail block):
    #    N = 300 -> pad to 384, tile 128 -> 3 blocks split 2/2 across the parallel axis.
    kb1, kb2, kb3 = jax.random.split(jax.random.PRNGKey(1), 3)
    b2, s2 = 3, 100
    logits_big = jax.random.normal(kb1, (b2, s2, num_labels), dtype=jnp.float32)
    labels_big = jax.random.randint(kb2, (b2, s2), 0, num_labels, dtype=jnp.int32)
    labels_big = jnp.where(jax.random.bernoulli(kb3, 0.3, (b2, s2)),
                           IGNORE_INDEX, labels_big)
    loss_big = jax.block_until_ready(
        weighted_cross_entropy_loss(logits_big, labels_big, class_weights, block_rows=128))
    ref_big = _reference_loss(logits_big, labels_big, class_weights)
    assert jnp.allclose(loss_big, ref_big, rtol=1e-5, atol=1e-5), (loss_big, ref_big)

    print("KERNEL_OK")
</pallas_src>

<mosaic_0001>
module attributes {stable_mosaic.version = 11 : i64} {
  func.func @_wce_kernel(%arg0: i32, %arg1: i32, %arg2: memref<13x128xf32, #tpu.memory_space<vmem>>, %arg3: memref<1x128xi32, #tpu.memory_space<vmem>>, %arg4: memref<13x1xf32, #tpu.memory_space<vmem>>, %arg5: memref<2x128xf32, #tpu.memory_space<vmem>>) attributes {dimension_semantics = [#tpu.dimension_semantics<parallel>, #tpu.dimension_semantics<arbitrary>], iteration_bounds = array<i64: 2, 1>, scalar_prefetch = 0 : i64, scratch_operands = 0 : i64, tpu.core_type = #tpu.core_type<tc>, window_params = [{transform_indices = @transform_0, window_bounds = array<i64: 13, 128>}, {transform_indices = @transform_1, window_bounds = array<i64: 1, 128>}, {pipeline_mode = #tpu.pipeline_mode<synchronous>, transform_indices = @transform_2, window_bounds = array<i64: 13, 1>}, {transform_indices = @transform_3, window_bounds = array<i64: 2, 128>}]} {
    %c0_i32 = arith.constant 0 : i32
    %0 = arith.cmpi eq, %arg1, %c0_i32 : i32
    %1 = arith.extui %0 : i1 to i32
    %c0_i32_0 = arith.constant 0 : i32
    %2 = arith.cmpi ne, %1, %c0_i32_0 : i32
    scf.if %2 {
      %cst_20 = arith.constant 0.000000e+00 : f32
      %50 = vector.broadcast %cst_20 : f32 to vector<2x128xf32>
      %c0_21 = arith.constant 0 : index
      %c0_22 = arith.constant 0 : index
      %51 = vector.load %arg5[%c0_21, %c0_22] : memref<2x128xf32, #tpu.memory_space<vmem>>, vector<2x128xf32>
      tpu.vector_store %arg5[%c0_21, %c0_22], %50 {strides = array<i32>} : memref<2x128xf32, #tpu.memory_space<vmem>>, vector<2x128xf32>,
    } else {
    }
    %c0 = arith.constant 0 : index
    %c0_1 = arith.constant 0 : index
    %3 = vector.load %arg2[%c0, %c0_1] : memref<13x128xf32, #tpu.memory_space<vmem>>, vector<13x128xf32>
    %c0_2 = arith.constant 0 : index
    %c0_3 = arith.constant 0 : index
    %4 = vector.load %arg3[%c0_2, %c0_3] : memref<1x128xi32, #tpu.memory_space<vmem>>, vector<1x128xi32>
    %c0_4 = arith.constant 0 : index
    %c0_5 = arith.constant 0 : index
    %5 = vector.load %arg4[%c0_4, %c0_5] : memref<13x1xf32, #tpu.memory_space<vmem>>, vector<13x1xf32>
    %c1_i32 = arith.constant 1 : i32
    %6 = arith.muli %arg0, %c1_i32 : i32
    %7 = arith.addi %6, %arg1 : i32
    %c128_i32 = arith.constant 128 : i32
    %8 = arith.muli %7, %c128_i32 : i32
    %9 = tpu.iota {dimensions = array<i32: 1>} : vector<1x128xi32>
    %10 = vector.broadcast %8 : i32 to vector<1x128xi32>
    %11 = arith.addi %10, %9 : vector<1x128xi32>
    %c-100_i32 = arith.constant -100 : i32
    %12 = vector.broadcast %c-100_i32 : i32 to vector<1x128xi32>
    %13 = arith.cmpi ne, %4, %12 : vector<1x128xi32>
    %c16_i32 = arith.constant 16 : i32
    %14 = vector.broadcast %c16_i32 : i32 to vector<1x128xi32>
    %15 = arith.cmpi slt, %11, %14 : vector<1x128xi32>
    %16 = arith.andi %13, %15 : vector<1x128xi1>
    %cst = arith.constant dense<0xFF800000> : vector<128xf32>
    %17 = vector.multi_reduction <maximumf>, %3, %cst [0] : vector<13x128xf32> to vector<128xf32>
    %18 = vector.shape_cast %17 : vector<128xf32> to vector<1x128xf32>
    %19 = vector.broadcast %18 : vector<1x128xf32> to vector<13x128xf32>
    %20 = arith.subf %3, %19 : vector<13x128xf32>
    %21 = math.exp %20 : vector<13x128xf32>
    %cst_6 = arith.constant dense<0.000000e+00> : vector<128xf32>
    %22 = vector.multi_reduction <add>, %21, %cst_6 [0] : vector<13x128xf32> to vector<128xf32>
    %23 = vector.shape_cast %22 : vector<128xf32> to vector<1x128xf32>
    %24 = math.log %23 : vector<1x128xf32>
    %25 = tpu.iota {dimensions = array<i32: 0>} : vector<13x128xi32>
    %26 = vector.broadcast %4 : vector<1x128xi32> to vector<13x128xi32>
    %27 = arith.cmpi eq, %25, %26 : vector<13x128xi32>
    %28 = vector.shape_cast %5 : vector<13x1xf32> to vector<13x1xf32>
    %29 = vector.broadcast %28 : vector<13x1xf32> to vector<13x128xf32>
    %cst_7 = arith.constant 0.000000e+00 : f32
    %30 = vector.broadcast %cst_7 : f32 to vector<13x128xf32>
    %31 = arith.select %27, %20, %30 : vector<13x128xi1>, vector<13x128xf32>
    %cst_8 = arith.constant dense<0.000000e+00> : vector<128xf32>
    %32 = vector.multi_reduction <add>, %31, %cst_8 [0] : vector<13x128xf32> to vector<128xf32>
    %33 = vector.shape_cast %32 : vector<128xf32> to vector<1x128xf32>
    %cst_9 = arith.constant 0.000000e+00 : f32
    %34 = vector.broadcast %cst_9 : f32 to vector<13x128xf32>
    %35 = arith.select %27, %29, %34 : vector<13x128xi1>, vector<13x128xf32>
    %cst_10 = arith.constant dense<0.000000e+00> : vector<128xf32>
    %36 = vector.multi_reduction <add>, %35, %cst_10 [0] : vector<13x128xf32> to vector<128xf32>
    %37 = vector.shape_cast %36 : vector<128xf32> to vector<1x128xf32>
    %38 = arith.subf %24, %33 : vector<1x128xf32>
    %39 = arith.mulf %37, %38 : vector<1x128xf32>
    %cst_11 = arith.constant 0.000000e+00 : f32
    %40 = vector.broadcast %cst_11 : f32 to vector<1x128xf32>
    %41 = arith.select %16, %39, %40 : vector<1x128xi1>, vector<1x128xf32>
    %cst_12 = arith.constant 0.000000e+00 : f32
    %42 = vector.broadcast %cst_12 : f32 to vector<1x128xf32>
    %43 = arith.select %16, %37, %42 : vector<1x128xi1>, vector<1x128xf32>
    %c0_13 = arith.constant 0 : index
    %c0_14 = arith.constant 0 : index
    %44 = vector.load %arg5[%c0_13, %c0_14] : memref<2x128xf32, #tpu.memory_space<vmem>>, vector<1x128xf32>
    %45 = arith.addf %44, %41 : vector<1x128xf32>
    %c0_15 = arith.constant 0 : index
    %c0_16 = arith.constant 0 : index
    %46 = vector.load %arg5[%c0_15, %c0_16] : memref<2x128xf32, #tpu.memory_space<vmem>>, vector<1x128xf32>
    tpu.vector_store %arg5[%c0_15, %c0_16], %45 {strides = array<i32>} : memref<2x128xf32, #tpu.memory_space<vmem>>, vector<1x128xf32>,
    %c1 = arith.constant 1 : index
    %c0_17 = arith.constant 0 : index
    %47 = vector.load %arg5[%c1, %c0_17] : memref<2x128xf32, #tpu.memory_space<vmem>>, vector<1x128xf32>
    %48 = arith.addf %47, %43 : vector<1x128xf32>
    %c1_18 = arith.constant 1 : index
    %c0_19 = arith.constant 0 : index
    %49 = vector.load %arg5[%c1_18, %c0_19] : memref<2x128xf32, #tpu.memory_space<vmem>>, vector<1x128xf32>
    tpu.vector_store %arg5[%c1_18, %c0_19], %48 {strides = array<i32>} : memref<2x128xf32, #tpu.memory_space<vmem>>, vector<1x128xf32>,
    return
  }
  func.func @transform_0(%arg0: i32, %arg1: i32) -> (i32, i32) {
    %c1_i32 = arith.constant 1 : i32
    %0 = arith.muli %arg0, %c1_i32 : i32
    %1 = arith.addi %0, %arg1 : i32
    %c0_i32 = arith.constant 0 : i32
    %2 = arith.minsi %1, %c0_i32 : i32
    %c0_i32_0 = arith.constant 0 : i32
    %c0_i32_1 = arith.constant 0 : i32
    return %c0_i32_0, %2 : i32, i32
  }
  func.func @transform_1(%arg0: i32, %arg1: i32) -> (i32, i32) {
    %c1_i32 = arith.constant 1 : i32
    %0 = arith.muli %arg0, %c1_i32 : i32
    %1 = arith.addi %0, %arg1 : i32
    %c0_i32 = arith.constant 0 : i32
    %2 = arith.minsi %1, %c0_i32 : i32
    %c0_i32_0 = arith.constant 0 : i32
    %c0_i32_1 = arith.constant 0 : i32
    return %c0_i32_0, %2 : i32, i32
  }
  func.func @transform_2(%arg0: i32, %arg1: i32) -> (i32, i32) {
    %c0_i32 = arith.constant 0 : i32
    %c0_i32_0 = arith.constant 0 : i32
    %c0_i32_1 = arith.constant 0 : i32
    return %c0_i32, %c0_i32_0 : i32, i32
  }
  func.func @transform_3(%arg0: i32, %arg1: i32) -> (i32, i32) {
    %c0_i32 = arith.constant 0 : i32
    %c0_i32_0 = arith.constant 0 : i32
    return %c0_i32, %arg0 : i32, i32
  }
}

</mosaic_0001>

<bundles_post_ra>
// kernel: tpu_custom_call.1
= control target key start
LH: loop header
LB: loop body
LE: loop exit
PB: predicated region body
PF: predicated region fallthrough
CT: control target
= control target key end

     0   :  { %8 = vsyncpa [#allocation3], 0  ;;  %s727_s0 = inlined_call_operand.vmem [shape: f32[13,128], index: 0, kind: input, shape index: {}]   ;;  %s728_s1 = inlined_call_operand.vmem [shape: s32[1,128], index: 1, kind: input, shape index: {}]   ;;  %s729_s2 = inlined_call_operand.vmem [shape: f32[13,1], index: 2, kind: input, shape index: {}]   ;;  %s730_s3 = inlined_call_operand.hbm [shape: f32[2,256], index: 3, kind: output, shape index: {}]  }
   0x1   :  { %10 = vsyncpa [#allocation3 + $0x1], 0  ;;  %s600_s12 = smov 0   ;;  %s602_s13 = smov 0  }
   0x2   :  { %s604_s14 = smov 0   ;;  %s606_s15 = smov 0  }
   0x3   :  { %s608_s16 = smov 0   ;;  %s610_s17 = smov 0  }
   0x4 LB: > { %s417_s18 = sadd.s32 4294967295, %s575_s17   ;;  %s418_s19 = sadd.s32 4294967294, %s575_s17   ;;  %s575_s17 = sphi %s610_s17, %s16_s17   ;;  %s571_s16 = sphi %s608_s16, %s737_s16   ;;  %s567_s15 = sphi %s606_s15, %s736_s15   ;;  %s563_s14 = sphi %s604_s14, %s735_s14   ;;  %s559_s13 = sphi %s602_s13, %s734_s13   ;;  %s555_s12 = sphi %s600_s12, %s733_s12  }
   0x5   : > { %s28_s20 = sadd.s32 1, %s571_s16  ;;  %s120_s21 = sadd.s32 1, %s563_s14 }
   0x6   : > { %p30_p0 = scmp.ge.s32.totalorder %s28_s20, 2  ;;  %p130_p1 = scmp.ne.s32.totalorder %s563_s14, %s559_s13 }
   0x7   : > { %p131_p2 = scmp.eq.s32.totalorder %s417_s18, 1  ;;  %p136_p3 = scmp.ne.s32.totalorder %s559_s13, %s555_s12 }
   0x8   : > { %s739_s20 = smov (%p30_p0, %s28_s20), 0  ;;  %p137_p5 = scmp.eq.s32.totalorder %s418_s19, 1 }
   0x9   : > { %p640_p4 = por %p131_p2, %p130_p1  ;;  %s117_s23 = ssub.s32 %s571_s16, %s739_s20 }
   0xa   : > { %p421_p6 = scmp.ge.s32.totalorder %s575_s17, 1  ;;  %p118_p7 = scmp.eq.s32.totalorder %s117_s23, 0 }
   0xb   : > { %p647_p8 = por %p137_p5, %p136_p3  ;;  %p183_p9 = scmp.lt.s32.totalorder %s575_s17, 3 }
   0xc   : > { %s653_s25 = scalar_select %p118_p7, %s563_s14, %s120_s21  }
   0xd   : > { %p184_p10 = pnand %p421_p6, %p183_p9 }
   0xe   : > { %s212_s30 = sand.u32 (!%p184_p10), 1, %s559_s13   ;;  %p216_p11 = scmp.lt.s32.totalorder (!%p184_p10), %s567_s15, 0 }
   0xf   : > { %187 = sbr.rel (%p184_p10) target bundleno = 183 (0xb7), region = 32  ;;  %s422_s4 = sshll.u32 (!%p184_p10), %s212_s30, 1 }
  0x10   : > { %s664_s5 = scalar_lea.vmem (!%p184_p10), [#allocation2], %s422_s4  ;;  %s430_s21 = sshll.u32 (!%p184_p10), %s567_s15, 7 }
  0x11   : > { %s432_s23 = sshll.u32 (!%p184_p10), %s567_s15, 5  ;;  %s341_s26 = sshll.u32 (!%p184_p10), %s664_s5, 4  ;;  %s342_s26 = int_to_ptr.vmem [resolvable:$true] %s341_s26 }
  0x12   : > { %s339_s29 = scalar_lea.hbm (!%p184_p10), %s730_s3, %s432_s23  ;;  %s328_s4 = scalar_lea.sflag (!%p184_p10), [#allocation3], %s212_s30 }
  0x14   : > { %v243_v0 = vld [vmem:[%s729_s2 + $0x8] sm:$0x1f]  ;;  %v577_v1 = vmov 0   ;;  %v242_v2 = vld [vmem:[%s729_s2] sm:$0xff]  ;;  %v578_v3 = vmov 0.0   ;;  %s217_s6 = scalar_select %p216_p11, %s567_s15, 0  ;;  %v246_v19 = vlaneseq  ;;  %v248_v49 = vstv %s430_s21 }
  0x15   : > { %492 = vset.pattern.permute.xlu0 %v577_v1  ;;  %238 = vst [vmem:[%s664_s5] sm:$0x3] %v578_v3  ;;  %vm253_vm0 = vcmask 1044480  }
  0x16   : > { %294 = vperm.xlu0 %492, %v243_v0   ;;  %s741_s6 = smov (!%p216_p11, %s217_s6), 0  ;;  %v279_v22 = vshrl.u32 %v246_v19, 7  ;;  %v247_v47 = vand.u32 127, %v246_v19 }
  0x17   : > { %s426_s7 = sshll.u32 %s741_s6, 3  ;;  %s230_s19 = scalar_lea.vmem %s728_s1, %s741_s6 }
  0x18   : > { %s221_s10 = scalar_lea.vmem %s727_s0, %s426_s7  ;;  %v283_v24 = vsub.s32 0, %v279_v22  ;;  %v241_v25 = vld [vmem:[%s230_s19] sm:$0x1]  ;;  %v280_v27 = vadd.s32 8, %v279_v22  ;;  %v249_v53 = vadd.s32 %v248_v49, %v247_v47  ;;  %s499_s6 = scalar_lea.vmem %s342_s26, 32 }
  0x19   : > { %v240_v4 = vld [vmem:[%s221_s10 + $0x8] sm:$0x1f]  ;;  %v239_v5 = vld [vmem:[%s221_s10] sm:$0xff]  ;;  %vm250_vm4 = vcmp.ne.s32.totalorder %v241_v25, 4294967196  ;;  %p500_p12 = scmp.ne.s32.totalorder %s342_s26, %s499_s6  ;;  %s579_s7 = smov [#allocation2]  }
  0x1a   : > { %289 = vperm.xlu0 %492, %v242_v2   ;;  %v254_v6 = vsel %vm253_vm0, %v240_v4, -inf  ;;  %v284_v28 = vrot.slane %v241_v25, %v283_v24  ;;  %vm251_vm3 = vcmp.lt.s32.totalorder %v249_v53, 16  ;;  %s503_s15 = sshll.u32 %s579_s7, 4  ;;  %s504_s15 = int_to_ptr.vmem [resolvable:$false] %s503_s15 }
  0x1b   : > { %v255_v7 = vmax.f32 %v239_v5, %v254_v6  ;;  %vm252_vm5 = vmand %vm250_vm4, %vm251_vm3  ;;  %p501_p13 = pnand %p500_p12, %p640_p4  ;;  %s505_s8 = scalar_lea.vmem %s504_s15, 64 }
  0x1c   : > { %vm286_vm1 = vcmp.eq.s32.totalorder %v280_v27, %v284_v28  ;;  %vm285_vm2 = vcmp.eq.s32.totalorder %v279_v22, %v284_v28  ;;  %v324_v62 = vld [vmem:[%s664_s5 + $0x1] sm:$0x1]  ;;  %v321_v1 = vld [vmem:[%s664_s5] sm:$0x1]  ;;  %p506_p1 = scmp.lt.s32.totalorder %s342_s26, %s504_s15  ;;  %p507_p2 = scmp.lt.s32.totalorder %s505_s8, %s499_s6 }
  0x1d   : > { %v256_v8 = vrot.slane %v255_v7, 4  ;;  %p502_p0 = pneg %p501_p13 }
  0x1e   : > { %p508_p3 = por %p507_p2, %p506_p1 }
  0x1f   : > { %v257_v9 = vmax.f32 %v255_v7, %v256_v8 }
  0x20   : > { %p509_p5 = pnand %p508_p3, %p502_p0 }
  0x21   : > { %v258_v10 = vrot.slane %v257_v9, 2 }
  0x23   : > { %v259_v11 = vmax.f32 %v257_v9, %v258_v10 }
  0x25   : > { %v260_v12 = vrot.slane %v259_v11, 1 }
  0x27   : > { %v261_v13 = vmax.f32 %v259_v11, %v260_v12 }
  0x29   : > { %v263_v14 = vsub.f32 %v240_v4, %v261_v13  ;;  %v262_v15 = vsub.f32 %v239_v5, %v261_v13 }
  0x2b   : > { %v266_v16 = vmul.f32 1.442695, %v263_v14  ;;  %v264_v17 = vmul.f32 1.442695, %v262_v15  ;;  %v298_v31 = vsel %vm286_vm1, %v263_v14, 0.0  ;;  %v297_v34 = vsel %vm285_vm2, %v262_v15, 0.0 }
  0x2c   : > { %v299_v33 = vsel %vm253_vm0, %v298_v31, 0.0 }
  0x2d   : > { %493 = vpow2.f32 %v266_v16  ;;  %v300_v36 = vadd.f32 %v299_v33, %v297_v34 }
  0x2e   : > { %495 = vpow2.f32 %v264_v17 }
  0x2f   : > { %v301_v38 = vrot.slane %v300_v36, 4 }
  0x31   : > { %v302_v39 = vadd.f32 %v301_v38, %v300_v36 }
  0x33   : > { %v303_v41 = vrot.slane %v302_v39, 2 }
  0x35   : > { %v304_v44 = vadd.f32 %v303_v41, %v302_v39 }
  0x37   : > { %v305_v50 = vrot.slane %v304_v44, 1 }
  0x39   : > { %v306_v56 = vadd.f32 %v305_v50, %v304_v44 }
  0x3a   : > { %v494_v18 = vpop.eup %493 }
  0x3b   : > { %v496_v20 = vpop.eup %495  ;;  %v268_v21 = vsel %vm253_vm0, %v494_v18, 0.0 }
  0x3c   : > { %v269_v23 = vadd.f32 %v496_v20, %v268_v21 }
  0x3e   : > { %v270_v26 = vrot.slane %v269_v23, 4 }
  0x40   : > { %v271_v29 = vadd.f32 %v270_v26, %v269_v23 }
  0x42   : > { %v272_v30 = vrot.slane %v271_v29, 2 }
  0x44   : > { %v273_v32 = vadd.f32 %v272_v30, %v271_v29 }
  0x46   : > { %v274_v35 = vrot.slane %v273_v32, 1 }
  0x48   : > { %v275_v37 = vadd.f32 %v274_v35, %v273_v32 }
  0x4a   : > { %497 = vlog2.f32 %v275_v37 }
  0x57   : > { %v498_v52 = vpop.eup %497 }
  0x58   : > { %v277_v55 = vmul.f32 0.6931472, %v498_v52 }
  0x5a   : > { %v317_v60 = vsub.f32 %v277_v55, %v306_v56 }
  0x91   : > { %v295_v40 = vpop.permute.xlu0 %294 }
  0x92   : > { %v308_v42 = vsel %vm286_vm1, %v295_v40, 0.0 }
  0x93   : > { %v309_v45 = vsel %vm253_vm0, %v308_v42, 0.0 }
  0x95   : > { %v290_v43 = vpop.permute.xlu0 %289 }
  0x96   : > { %v307_v46 = vsel %vm285_vm2, %v290_v43, 0.0 }
  0x97   : > { %v310_v48 = vadd.f32 %v309_v45, %v307_v46 }
  0x99   : > { %v311_v51 = vrot.slane %v310_v48, 4 }
  0x9b   : > { %v312_v54 = vadd.f32 %v311_v51, %v310_v48 }
  0x9d   : > { %v313_v57 = vrot.slane %v312_v54, 2 }
  0x9f   : > { %v314_v58 = vadd.f32 %v313_v57, %v312_v54 }
  0xa1   : > { %v315_v59 = vrot.slane %v314_v58, 1 }
  0xa3   : > { %v316_v61 = vadd.f32 %v315_v59, %v314_v58 }
  0xa5   : > { %v318_v63 = vmul.f32 %v317_v60, %v316_v61  ;;  %v320_v0 = vsel %vm252_vm5, %v316_v61, 0.0 }
  0xa6   : > { %v325_v2 = vadd.f32 %v324_v62, %v320_v0 }
  0xa7   : > { %v319_v3 = vsel %vm252_vm5, %v318_v63, 0.0 }
  0xa8   : > { %v322_v4 = vadd.f32 %v321_v1, %v319_v3  ;;  %326 = vst [vmem:[%s664_s5 + $0x1] sm:$0x1] %v325_v2 }
  0xaa   : > { %323 = vst [vmem:[%s664_s5] sm:$0x1] %v322_v4 }
  0xab   : > { %512 = shalt.err (!%p509_p5)
}
  0xac   : > { %s513_s9 = scalar_lea.hbm %s339_s29, 32  ;;  %s517_s10 = scalar_lea.hbm %s730_s3, 64 }
  0xad   : > { %p514_p6 = scmp.ne.s32.totalorder %s339_s29, %s513_s9  ;;  %p518_p10 = scmp.lt.s32.totalorder %s339_s29, %s730_s3 }
  0xae   : > { %p519_p11 = scmp.lt.s32.totalorder %s517_s10, %s513_s9 }
  0xaf   : > { %p515_p7 = pnand %p514_p6, %p640_p4 }
  0xb0   : > { %p520_p12 = por %p519_p11, %p518_p10 }
  0xb1   : > { %p516_p9 = pneg %p515_p7 }
  0xb3   : > { %p521_p13 = pnand %p520_p12, %p516_p9 }
  0xb5   : > { %524 = shalt.err (!%p521_p13)
}
  0xb6   : > { %435 = dma.vmem_to_hbm [thread:$0]  (%p640_p4), %s342_s26, 32, %s339_s29, %s328_s4  }
  0xb7 PF: > { %p441_p0 = scmp.ge.s32.totalorder %s575_s17, 2  ;;  %s353_s19 = sand.u32 1, %s555_s12  }
  0xb8   : > { %s354_s21 = scalar_lea.sflag [#allocation3], %s353_s19 }
  0xb9   : > { %p438_p1 = pnand %p441_p0, %p647_p8 }
  0xbb   : > { %p439_p2 = pneg %p438_p1 }
  0xbd   : > { %550 = dma.done.wait (%p439_p2), %s354_s21, 32  }
  0xbe   : > { %552 = vsyncadd (%p439_p2), %s354_s21, 4294967264  ;;  %s16_s17 = sadd.s32 1, %s575_s17   ;;  %s733_s12 = smov %s559_s13 }
  0xbf   : > { %p13_p3 = scmp.ge.s32.totalorder %s16_s17, 4   ;;  %s734_s13 = smov %s563_s14 }
  0xc0   : > { %s735_s14 = smov %s653_s25  ;;  %s736_s15 = smov %s571_s16 }
  0xc1   : > { %s737_s16 = smov %s739_s20  ;;  %15 = sbr.rel (!%p13_p3) target bundleno = 4 (0x4), region = 74 }
  0xc6   :  { %359 = vsyncpa [#allocation3], 1 }
  0xc7   :  { %361 = vsyncpa [#allocation3 + $0x1], 1 }

</bundles_post_ra>
